<compile_context>
chip_gen: v5e
topology: v5e:2x2
jax: 0.10.0
libtpu: 0.0.40
codegen_flags: <defaults>
</compile_context>

<pallas_src>
import functools

import jax
import jax.numpy as jnp
from jax import lax
from jax.experimental import pallas as pl
from jax.experimental.pallas import tpu as pltpu


def _round_up(a, b):
    return (a + b - 1) // b * b


def _cdiv(a, b):
    return (a + b - 1) // b


# ---------------------------------------------------------------------------
# Per-generation defaults (perf review: vmem_limit / tile_m / stash heuristic).
# ---------------------------------------------------------------------------
def _tpu_generation():
    try:
        kind = jax.devices()[0].device_kind.lower()
    except Exception:
        return 0
    for g in (7, 6, 5, 4):
        if ("v%d" % g) in kind or ("tpu%d" % g) in kind:
            return g
    return 0


def _defaults_for_generation(gen):
    if gen >= 7:      # v7x: 64 MiB VMEM / TensorCore, 2 TCs -> keep tiles modest
        return dict(vmem_limit=48 * 1024 * 1024, tile_m=512, stash_min_d=1024)
    if gen == 6:      # v6e: 128 MiB VMEM
        return dict(vmem_limit=100 * 1024 * 1024, tile_m=1024, stash_min_d=1024)
    if gen == 5:      # v5e: 128 MiB VMEM, weakest MXU/HBM -> stash hidden earlier
        return dict(vmem_limit=100 * 1024 * 1024, tile_m=1024, stash_min_d=512)
    return dict(vmem_limit=48 * 1024 * 1024, tile_m=512, stash_min_d=1024)


# ---------------------------------------------------------------------------
# Single-buffered resident weights (pl.Buffered(1)); capability probed once.
# ---------------------------------------------------------------------------
_SINGLE_BUFFER_OK = None


def _single_buffer_supported():
    global _SINGLE_BUFFER_OK
    if _SINGLE_BUFFER_OK is not None:
        return _SINGLE_BUFFER_OK
    if not hasattr(pl, "Buffered"):
        _SINGLE_BUFFER_OK = False
        return _SINGLE_BUFFER_OK

    def _probe_kernel(w_ref, o_ref):
        o_ref[...] = w_ref[...] * 2.0

    try:
        w = jnp.ones((8, 128), jnp.float32)
        out = pl.pallas_call(
            _probe_kernel,
            out_shape=jax.ShapeDtypeStruct((16, 128), jnp.float32),
            grid=(2,),
            in_specs=[pl.BlockSpec((8, 128), lambda i: (0, 0),
                                   pipeline_mode=pl.Buffered(1))],
            out_specs=pl.BlockSpec((8, 128), lambda i: (i, 0)),
        )(w)
        jax.block_until_ready(out)
        _SINGLE_BUFFER_OK = True
    except Exception:
        _SINGLE_BUFFER_OK = False
    return _SINGLE_BUFFER_OK


def _spec(shape, index_map, single_buffer=False):
    if single_buffer and _single_buffer_supported():
        return pl.BlockSpec(shape, index_map, pipeline_mode=pl.Buffered(1))
    return pl.BlockSpec(shape, index_map)


# ---------------------------------------------------------------------------
# Tile sizing under an explicit VMEM budget.
# ---------------------------------------------------------------------------
def _vmem_estimate(tile_m, tile_h, Dp, num_h, in_item, stash, stash_item, out_item):
    inter = 2 * tile_m * tile_h * 4                 # f32 hidden-tile intermediates
    wbuf = 1 if num_h == 1 else 2                   # single-buffered when resident
    # stats kernel
    s = inter
    s += tile_m * Dp * in_item * 2                  # x tile (double-buffered)
    s += Dp * tile_h * in_item * wbuf               # w1
    s += 8 * tile_h * 4                             # b1
    s += 2 * (8 * tile_h * 4 * 2)                   # sum / sumsq partial outputs
    if stash:
        s += tile_m * tile_h * stash_item * 2       # stashed hidden tile
    # apply kernel
    a = inter
    a += tile_m * Dp * out_item * 2                 # output tile
    a += tile_m * Dp * 4                            # f32 accumulator scratch
    a += tile_h * Dp * in_item * wbuf               # w2
    a += 8 * Dp * 4                                 # b2
    if stash:
        a += tile_m * tile_h * stash_item * 2
    else:
        a += tile_m * Dp * in_item * 2              # x tile
        a += Dp * tile_h * in_item * wbuf           # w1
        a += 8 * tile_h * 4
    return max(s, a)


def _choose_tiles(M_rows, Dp, Hp, *, tile_m, tile_h, tile_m_default, budget,
                  in_item, stash, stash_item, out_item):
    tm = tile_m_default if tile_m is None else tile_m
    tm = min(tm, M_rows)
    tm = max(16, (tm // 16) * 16)

    if tile_h is not None:
        return tm, tile_h

    k = Hp // 128
    cands = [128 * d for d in range(k, 0, -1) if k % d == 0]
    while True:
        for th in cands:
            if _vmem_estimate(tm, th, Dp, Hp // th, in_item, stash,
                              stash_item, out_item) <= budget:
                return tm, th
        if tm <= 16:
            return 16, 128
        tm = max(16, ((tm // 2) // 16) * 16)


# ---------------------------------------------------------------------------
# Kernels
# ---------------------------------------------------------------------------
def _gelu_f32(x, approximate):
    if approximate:
        c = jnp.float32(0.7978845608028654)       # sqrt(2/pi), tanh GELU (EUP)
        return 0.5 * x * (1.0 + jnp.tanh(c * (x + jnp.float32(0.044715) * x * x * x)))
    return 0.5 * x * (1.0 + lax.erf(x * jnp.float32(0.7071067811865476)))


def _stats_kernel(nrows_ref, x_ref, w1_ref, b1_ref, sum_ref, sq_ref, *maybe_h,
                  stash_hidden, needs_row_mask):
    # grid = (num_m [parallel], num_h)
    m_idx = pl.program_id(0)
    tile_m = x_ref.shape[0]

    # Lin1 on the MXU; f32 accumulation, f32 bias add.
    h = jnp.dot(x_ref[...], w1_ref[...], preferred_element_type=jnp.float32)
    h = h + b1_ref[...]

    if stash_hidden:
        maybe_h[0][...] = h.astype(maybe_h[0].dtype)

    def emit(hm):
        # Row-group partial sums: pure vreg (VALU) adds; the final cross-lane
        # reduction of the (8, tile_h) partials is done once by XLA outside.
        ps = hm[0:8, :]
        pq = ps * ps
        for i in range(1, tile_m // 8):
            blk = hm[i * 8:(i + 1) * 8, :]
            ps = ps + blk
            pq = pq + blk * blk
        sum_ref[...] = ps
        sq_ref[...] = pq

    if needs_row_mask:
        last = pl.num_programs(0) - 1

        @pl.when(m_idx != last)            # mask only on the last (ragged) tile
        def _full():
            emit(h)

        @pl.when(m_idx == last)
        def _masked():
            limit = nrows_ref[0] - m_idx * tile_m
            rid = lax.broadcasted_iota(jnp.int32, h.shape, 0)
            emit(jnp.where(rid < limit, h, 0.0))
    else:
        emit(h)


def _apply_kernel(scal_ref, *refs, stash_hidden, gelu_approximate):
    # grid = (num_m [parallel], num_h [reduction])
    if stash_hidden:
        h_ref, w2_ref, b2_ref, o_ref, acc_ref = refs
    else:
        x_ref, w1_ref, b1_ref, w2_ref, b2_ref, o_ref, acc_ref = refs

    h_idx = pl.program_id(1)

    @pl.when(h_idx == 0)
    def _init():
        acc_ref[...] = jnp.zeros_like(acc_ref)

    if stash_hidden:
        h = h_ref[...].astype(jnp.float32)
    else:
        h = jnp.dot(x_ref[...], w1_ref[...], preferred_element_type=jnp.float32)
        h = h + b1_ref[...]

    # Folded BatchNorm affine: h*scale + shift  (scale/shift precomputed outside).
    hn = h * scal_ref[0] + scal_ref[1]
    a = _gelu_f32(hn, gelu_approximate)
    # Dropout(p=0.0) == identity.

    acc_ref[...] += jnp.dot(a.astype(w2_ref.dtype), w2_ref[...],
                            preferred_element_type=jnp.float32)

    @pl.when(h_idx == pl.num_programs(1) - 1)
    def _store():
        o_ref[...] = (acc_ref[...] + b2_ref[...]).astype(o_ref.dtype)


# ---------------------------------------------------------------------------
# Wrapper
# ---------------------------------------------------------------------------
def feedforward_pallas(x, w1, b1, w2, b2, gamma=1.0, beta=0.0, eps=1e-5,
                       compute_dtype=jnp.bfloat16, out_dtype=None,
                       tile_m=None, tile_h=None, stash_hidden=None,
                       gelu_approximate=False, vmem_limit_bytes=None):
    """x: (B, N, dim). w1: (dim, hidden), b1: (hidden,), w2: (hidden, dim), b2: (dim,)."""
    B, N, D = x.shape
    H = w1.shape[1]
    M = B * N
    if out_dtype is None:
        out_dtype = x.dtype

    gen = _tpu_generation()
    cfg = _defaults_for_generation(gen)
    if vmem_limit_bytes is None:
        vmem_limit_bytes = cfg["vmem_limit"]
    if stash_hidden is None:
        # Recompute Lin1 in the apply pass when D is small; stash the hidden to
        # HBM when a second x read + M*D*H MACs would cost more (esp. v5e).
        stash_hidden = D >= cfg["stash_min_d"]

    Dp = _round_up(D, 128)
    Hp = _round_up(H, 128)
    in_item = jnp.dtype(compute_dtype).itemsize
    stash_item = in_item
    out_item = jnp.dtype(out_dtype).itemsize

    # ---- operands; skip padding copies entirely when already aligned -------
    x2d = x.reshape(M, D)
    M_rows = M if M % 16 == 0 else _round_up(M, 16)
    if D == Dp and M_rows == M:
        xk = x2d.astype(compute_dtype)                     # no copy if dtypes match
    else:
        xk = jnp.zeros((M_rows, Dp), compute_dtype).at[:M, :D].set(
            x2d.astype(compute_dtype))

    if (D, H) == (Dp, Hp):
        w1p = w1.astype(compute_dtype)
    else:
        w1p = jnp.zeros((Dp, Hp), compute_dtype).at[:D, :H].set(w1.astype(compute_dtype))
    if (H, D) == (Hp, Dp):
        w2p = w2.astype(compute_dtype)
    else:
        w2p = jnp.zeros((Hp, Dp), compute_dtype).at[:H, :D].set(w2.astype(compute_dtype))
    if H == Hp:
        b1p = b1.reshape(1, H).astype(jnp.float32)
    else:
        b1p = jnp.zeros((1, Hp), jnp.float32).at[0, :H].set(b1.astype(jnp.float32))
    if D == Dp:
        b2p = b2.reshape(1, D).astype(jnp.float32)
    else:
        b2p = jnp.zeros((1, Dp), jnp.float32).at[0, :D].set(b2.astype(jnp.float32))

    # ---- tiles --------------------------------------------------------------
    tm, th = _choose_tiles(
        M_rows, Dp, Hp, tile_m=tile_m, tile_h=tile_h,
        tile_m_default=cfg["tile_m"], budget=int(0.85 * vmem_limit_bytes),
        in_item=in_item, stash=stash_hidden, stash_item=stash_item,
        out_item=out_item)
    num_m = _cdiv(M_rows, tm)
    num_h = Hp // th
    needs_row_mask = (num_m * tm != M)

    nrows = jnp.array([M], jnp.int32)
    cparams = pltpu.CompilerParams(
        dimension_semantics=("parallel", "arbitrary"),
        vmem_limit_bytes=int(vmem_limit_bytes))

    # ---- pass 1: Lin1 + BN partial statistics (+ optional hidden stash) -----
    stats_out_shapes = [
        jax.ShapeDtypeStruct((num_m * 8, Hp), jnp.float32),   # per-tile sum partials
        jax.ShapeDtypeStruct((num_m * 8, Hp), jnp.float32),   # per-tile sumsq partials
    ]
    stats_out_specs = [
        pl.BlockSpec((8, th), lambda m, h: (m, h)),
        pl.BlockSpec((8, th), lambda m, h: (m, h)),
    ]
    if stash_hidden:
        stats_out_shapes.append(jax.ShapeDtypeStruct((M_rows, Hp), compute_dtype))
        stats_out_specs.append(pl.BlockSpec((tm, th), lambda m, h: (m, h)))

    stats_out = pl.pallas_call(
        functools.partial(_stats_kernel, stash_hidden=stash_hidden,
                          needs_row_mask=needs_row_mask),
        out_shape=tuple(stats_out_shapes),
        grid=(num_m, num_h),
        in_specs=[
            pl.BlockSpec(memory_space=pltpu.MemorySpace.SMEM),            # [M_real]
            pl.BlockSpec((tm, Dp), lambda m, h: (m, 0)),                  # x tile
            _spec((Dp, th), lambda m, h: (0, h), single_buffer=(num_h == 1)),
            _spec((1, th), lambda m, h: (0, h), single_buffer=(num_h == 1)),
        ],
        out_specs=tuple(stats_out_specs),
        compiler_params=cparams,
    )(nrows, xk, w1p, b1p)

    if stash_hidden:
        sum_parts, sq_parts, h_stash = stats_out
    else:
        sum_parts, sq_parts = stats_out

    # ---- tiny global combine + folded BN affine (XLA, f32) ------------------
    inv_n = jnp.float32(1.0 / (M * H))                     # real (unpadded) counts
    mu = jnp.sum(sum_parts, dtype=jnp.float32) * inv_n
    var = jnp.maximum(jnp.sum(sq_parts, dtype=jnp.float32) * inv_n - mu * mu, 0.0)
    scale = jnp.float32(gamma) * lax.rsqrt(var + jnp.float32(eps))
    shift = jnp.float32(beta) - mu * scale
    scal = jnp.stack([scale, shift])                       # f32[2] -> SMEM

    # ---- pass 2: normalize + GELU + Lin2 ------------------------------------
    if stash_hidden:
        apply_args = (scal, h_stash, w2p, b2p)
        apply_in_specs = [
            pl.BlockSpec(memory_space=pltpu.MemorySpace.SMEM),
            pl.BlockSpec((tm, th), lambda m, h: (m, h)),
            _spec((th, Dp), lambda m, h: (h, 0), single_buffer=(num_h == 1)),
            _spec((1, Dp), lambda m, h: (0, 0), single_buffer=True),
        ]
    else:
        apply_args = (scal, xk, w1p, b1p, w2p, b2p)
        apply_in_specs = [
            pl.BlockSpec(memory_space=pltpu.MemorySpace.SMEM),
            pl.BlockSpec((tm, Dp), lambda m, h: (m, 0)),
            _spec((Dp, th), lambda m, h: (0, h), single_buffer=(num_h == 1)),
            _spec((1, th), lambda m, h: (0, h), single_buffer=(num_h == 1)),
            _spec((th, Dp), lambda m, h: (h, 0), single_buffer=(num_h == 1)),
            _spec((1, Dp), lambda m, h: (0, 0), single_buffer=True),
        ]

    out2d = pl.pallas_call(
        functools.partial(_apply_kernel, stash_hidden=stash_hidden,
                          gelu_approximate=gelu_approximate),
        out_shape=jax.ShapeDtypeStruct((M_rows, Dp), out_dtype),
        grid=(num_m, num_h),
        in_specs=apply_in_specs,
        out_specs=pl.BlockSpec((tm, Dp), lambda m, h: (m, 0)),
        scratch_shapes=[pltpu.VMEM((tm, Dp), jnp.float32)],
        compiler_params=cparams,
    )(*apply_args)

    if M_rows != M or Dp != D:
        out2d = out2d[:M, :D]
    return out2d.reshape(B, N, D)


# ---------------------------------------------------------------------------
# Pure-JAX reference of the PyTorch forward (train-mode BatchNorm2d(1)).
# ---------------------------------------------------------------------------
def feedforward_ref(x, w1, b1, w2, b2, gamma=1.0, beta=0.0, eps=1e-5):
    h = jnp.dot(x, w1, precision=lax.Precision.HIGHEST) + b1
    mu = jnp.mean(h)
    var = jnp.mean(jnp.square(h - mu))
    hn = (h - mu) / jnp.sqrt(var + eps) * gamma + beta
    a = 0.5 * hn * (1.0 + lax.erf(hn * 0.7071067811865476))
    return jnp.dot(a, w2, precision=lax.Precision.HIGHEST) + b2


if __name__ == "__main__":
    # Small shapes consistent with the module: batch=2, seq=8, dim=32, hidden=64.
    B, N, DIM, HID = 2, 8, 32, 64
    key = jax.random.PRNGKey(0)
    kx, k1, kb1, k2, kb2 = jax.random.split(key, 5)
    x = jax.random.normal(kx, (B, N, DIM), jnp.float32)
    w1 = jax.random.normal(k1, (DIM, HID), jnp.float32) / jnp.sqrt(DIM)
    b1 = 0.01 * jax.random.normal(kb1, (HID,), jnp.float32)
    w2 = jax.random.normal(k2, (HID, DIM), jnp.float32) / jnp.sqrt(HID)
    b2 = 0.01 * jax.random.normal(kb2, (DIM,), jnp.float32)

    ref = feedforward_ref(x, w1, b1, w2, b2)

    # 1) f32 compute, recompute-hidden path (strict parity with the PyTorch module).
    out = jax.block_until_ready(feedforward_pallas(
        x, w1, b1, w2, b2, compute_dtype=jnp.float32, stash_hidden=False))
    assert out.shape == (B, N, DIM)
    assert jnp.allclose(out, ref, atol=2e-2, rtol=2e-2), "f32 recompute path mismatch"

    # 2) f32 compute, stashed-hidden path.
    out_s = jax.block_until_ready(feedforward_pallas(
        x, w1, b1, w2, b2, compute_dtype=jnp.float32, stash_hidden=True))
    assert jnp.allclose(out_s, ref, atol=2e-2, rtol=2e-2), "f32 stash path mismatch"

    # 3) bf16 MXU fast path with bf16 output (f32 accumulation / BN / GELU).
    out_bf = jax.block_until_ready(feedforward_pallas(
        x, w1, b1, w2, b2, compute_dtype=jnp.bfloat16, out_dtype=jnp.bfloat16))
    assert out_bf.shape == (B, N, DIM)
    assert jnp.allclose(out_bf.astype(jnp.float32), ref, atol=1.5e-1, rtol=1.5e-1), \
        "bf16 path mismatch"

    # 4) Aligned shape: no padding copies, ragged last M tile, H-tiled Lin2
    #    (num_h > 1), both hidden-handling paths.
    B2, N2, D2, H2 = 2, 56, 128, 256          # M = 112 (multiple of 16, ragged vs tile_m=64)
    kx2, k12, kb12, k22, kb22 = jax.random.split(jax.random.PRNGKey(1), 5)
    x2 = jax.random.normal(kx2, (B2, N2, D2), jnp.float32)
    w12 = jax.random.normal(k12, (D2, H2), jnp.float32) / jnp.sqrt(D2)
    b12 = 0.01 * jax.random.normal(kb12, (H2,), jnp.float32)
    w22 = jax.random.normal(k22, (H2, D2), jnp.float32) / jnp.sqrt(H2)
    b22 = 0.01 * jax.random.normal(kb22, (D2,), jnp.float32)
    ref2 = feedforward_ref(x2, w12, b12, w22, b22)
    for stash in (False, True):
        o2 = jax.block_until_ready(feedforward_pallas(
            x2, w12, b12, w22, b22, compute_dtype=jnp.float32,
            tile_m=64, tile_h=128, stash_hidden=stash))
        assert o2.shape == (B2, N2, D2)
        assert jnp.allclose(o2, ref2, atol=2e-2, rtol=2e-2), \
            f"ragged/H-tiled path mismatch (stash={stash})"

    print("KERNEL_OK")
</pallas_src>

<mosaic_0001>
module attributes {stable_mosaic.version = 11 : i64} {
  func.func @_probe_kernel(%arg0: i32, %arg1: memref<8x128xf32, #tpu.memory_space<vmem>>, %arg2: memref<8x128xf32, #tpu.memory_space<vmem>>) attributes {dimension_semantics = [#tpu.dimension_semantics<arbitrary>], iteration_bounds = array<i64: 2>, scalar_prefetch = 0 : i64, scratch_operands = 0 : i64, tpu.core_type = #tpu.core_type<tc>, window_params = [{pipeline_mode = #tpu.pipeline_mode<synchronous>, transform_indices = @transform_0, window_bounds = array<i64: 8, 128>}, {transform_indices = @transform_1, window_bounds = array<i64: 8, 128>}]} {
    %c0 = arith.constant 0 : index
    %c0_0 = arith.constant 0 : index
    %0 = vector.load %arg1[%c0, %c0_0] : memref<8x128xf32, #tpu.memory_space<vmem>>, vector<8x128xf32>
    %cst = arith.constant 2.000000e+00 : f32
    %1 = vector.broadcast %cst : f32 to vector<8x128xf32>
    %2 = arith.mulf %0, %1 : vector<8x128xf32>
    %c0_1 = arith.constant 0 : index
    %c0_2 = arith.constant 0 : index
    %3 = vector.load %arg2[%c0_1, %c0_2] : memref<8x128xf32, #tpu.memory_space<vmem>>, vector<8x128xf32>
    tpu.vector_store %arg2[%c0_1, %c0_2], %2 {strides = array<i32>} : memref<8x128xf32, #tpu.memory_space<vmem>>, vector<8x128xf32>,
    return
  }
  func.func @transform_0(%arg0: i32) -> (i32, i32) {
    %c0_i32 = arith.constant 0 : i32
    %c0_i32_0 = arith.constant 0 : i32
    %c0_i32_1 = arith.constant 0 : i32
    return %c0_i32, %c0_i32_0 : i32, i32
  }
  func.func @transform_1(%arg0: i32) -> (i32, i32) {
    %c0_i32 = arith.constant 0 : i32
    %c0_i32_0 = arith.constant 0 : i32
    return %arg0, %c0_i32 : i32, i32
  }
}

module attributes {stable_mosaic.version = 11 : i64} {
  func.func @_stats_kernel(%arg0: i32, %arg1: i32, %arg2: memref<1xi32, #tpu.memory_space<smem>>, %arg3: memref<16x128xf32, #tpu.memory_space<vmem>>, %arg4: memref<128x128xf32, #tpu.memory_space<vmem>>, %arg5: memref<1x128xf32, #tpu.memory_space<vmem>>, %arg6: memref<8x128xf32, #tpu.memory_space<vmem>>, %arg7: memref<8x128xf32, #tpu.memory_space<vmem>>) attributes {dimension_semantics = [#tpu.dimension_semantics<parallel>, #tpu.dimension_semantics<arbitrary>], iteration_bounds = array<i64: 1, 1>, scalar_prefetch = 0 : i64, scratch_operands = 0 : i64, tpu.core_type = #tpu.core_type<tc>, window_params = [{transform_indices = @transform_0, window_bounds = array<i64: 1>}, {transform_indices = @transform_1, window_bounds = array<i64: 16, 128>}, {transform_indices = @transform_2, window_bounds = array<i64: 128, 128>}, {transform_indices = @transform_3, window_bounds = array<i64: 1, 128>}, {transform_indices = @transform_4, window_bounds = array<i64: 8, 128>}, {transform_indices = @transform_5, window_bounds = array<i64: 8, 128>}]} {
    %c0 = arith.constant 0 : index
    %c0_0 = arith.constant 0 : index
    %0 = vector.load %arg3[%c0, %c0_0] : memref<16x128xf32, #tpu.memory_space<vmem>>, vector<16x128xf32>
    %c0_1 = arith.constant 0 : index
    %c0_2 = arith.constant 0 : index
    %1 = vector.load %arg4[%c0_1, %c0_2] : memref<128x128xf32, #tpu.memory_space<vmem>>, vector<128x128xf32>
    %cst = arith.constant dense<0.000000e+00> : vector<16x128xf32>
    %2 = tpu.matmul %0, %1, %cst {dimension_numbers = #tpu.dot_dimension_numbers<[1], [0], [0], [1], [0, 0, 1, 1], [], []>} : vector<16x128xf32>, vector<128x128xf32>, vector<16x128xf32> -> vector<16x128xf32>
    %c0_3 = arith.constant 0 : index
    %c0_4 = arith.constant 0 : index
    %3 = vector.load %arg5[%c0_3, %c0_4] : memref<1x128xf32, #tpu.memory_space<vmem>>, vector<1x128xf32>
    %4 = vector.broadcast %3 : vector<1x128xf32> to vector<16x128xf32>
    %5 = arith.addf %2, %4 : vector<16x128xf32>
    %6 = vector.extract_strided_slice %5 {offsets = [0, 0], sizes = [8, 128], strides = [1, 1]} : vector<16x128xf32> to vector<8x128xf32>
    %7 = arith.mulf %6, %6 : vector<8x128xf32>
    %8 = vector.extract_strided_slice %5 {offsets = [8, 0], sizes = [8, 128], strides = [1, 1]} : vector<16x128xf32> to vector<8x128xf32>
    %9 = arith.addf %6, %8 : vector<8x128xf32>
    %10 = arith.mulf %8, %8 : vector<8x128xf32>
    %11 = arith.addf %7, %10 : vector<8x128xf32>
    %c0_5 = arith.constant 0 : index
    %c0_6 = arith.constant 0 : index
    %12 = vector.load %arg6[%c0_5, %c0_6] : memref<8x128xf32, #tpu.memory_space<vmem>>, vector<8x128xf32>
    tpu.vector_store %arg6[%c0_5, %c0_6], %9 {strides = array<i32>} : memref<8x128xf32, #tpu.memory_space<vmem>>, vector<8x128xf32>,
    %c0_7 = arith.constant 0 : index
    %c0_8 = arith.constant 0 : index
    %13 = vector.load %arg7[%c0_7, %c0_8] : memref<8x128xf32, #tpu.memory_space<vmem>>, vector<8x128xf32>
    tpu.vector_store %arg7[%c0_7, %c0_8], %11 {strides = array<i32>} : memref<8x128xf32, #tpu.memory_space<vmem>>, vector<8x128xf32>,
    return
  }
  func.func @transform_0(%arg0: i32, %arg1: i32) -> i32 {
    %c0_i32 = arith.constant 0 : i32
    %c0_i32_0 = arith.constant 0 : i32
    return %c0_i32 : i32
  }
  func.func @transform_1(%arg0: i32, %arg1: i32) -> (i32, i32) {
    %c0_i32 = arith.constant 0 : i32
    %c0_i32_0 = arith.constant 0 : i32
    return %arg0, %c0_i32 : i32, i32
  }
  func.func @transform_2(%arg0: i32, %arg1: i32) -> (i32, i32) {
    %c0_i32 = arith.constant 0 : i32
    %c0_i32_0 = arith.constant 0 : i32
    return %c0_i32, %arg1 : i32, i32
  }
  func.func @transform_3(%arg0: i32, %arg1: i32) -> (i32, i32) {
    %c0_i32 = arith.constant 0 : i32
    %c0_i32_0 = arith.constant 0 : i32
    return %c0_i32, %arg1 : i32, i32
  }
  func.func @transform_4(%arg0: i32, %arg1: i32) -> (i32, i32) {
    %c0_i32 = arith.constant 0 : i32
    return %arg0, %arg1 : i32, i32
  }
  func.func @transform_5(%arg0: i32, %arg1: i32) -> (i32, i32) {
    %c0_i32 = arith.constant 0 : i32
    return %arg0, %arg1 : i32, i32
  }
}

</mosaic_0001>

<bundles_post_ra>
// kernel: tpu_custom_call.1
= control target key start
LH: loop header
LB: loop body
LE: loop exit
PB: predicated region body
PF: predicated region fallthrough
CT: control target
= control target key end

     0   :  { %6 = vsyncpa [#allocation3], 0  ;;  %s441_s0 = inlined_call_operand.hbm [shape: f32[8,128], index: 0, kind: input, shape index: {}]   ;;  %s442_s1 = inlined_call_operand.hbm [shape: f32[16,128], index: 1, kind: output, shape index: {}]  }
   0x1   :  { %7 = vsyncpa [#allocation4], 0 }
   0x2   :  { %9 = vsyncpa [#allocation4 + $0x1], 0  ;;  %s357_s6 = smov 0   ;;  %s359_s7 = smov 0  }
   0x3   :  { %s361_s8 = smov 0   ;;  %s363_s9 = smov 0  }
   0x4 LB: > { %s378_s10 = sadd.s32 4294967295, %s344_s9   ;;  %s188_s11 = sadd.s32 4294967294, %s344_s9   ;;  %s344_s9 = sphi %s363_s9, %s448_s9   ;;  %s340_s8 = sphi %s361_s8, %s447_s8   ;;  %s336_s7 = sphi %s359_s7, %s446_s7   ;;  %s332_s6 = sphi %s357_s6, %s445_s6  }
   0x5   : > { %s382_s12 = sadd.s32 1, %s344_s9   ;;  %s43_s13 = sadd.s32 1, %s340_s8 }
   0x6   : > { %s40_s14 = ssub.s32 %s344_s9, %s382_s12  ;;  %p53_p0 = scmp.ne.s32.totalorder %s340_s8, %s336_s7 }
   0x7   : > { %p41_p1 = scmp.eq.s32.totalorder %s40_s14, 0  ;;  %p54_p2 = scmp.eq.s32.totalorder %s378_s10, 1 }
   0x8   : > { %p59_p3 = scmp.ne.s32.totalorder %s336_s7, %s332_s6  ;;  %p60_p4 = scmp.eq.s32.totalorder %s188_s11, 1 }
   0x9   : > { %s393_s15 = scalar_select %p41_p1, %s340_s8, %s43_s13  }
   0xa   : > { %p395_p5 = por %p54_p2, %p53_p0  ;;  %p399_p6 = por %p60_p4, %p59_p3 }
   0xb   : > { %p189_p7 = scmp.ge.s32.totalorder %s344_s9, 1  ;;  %p67_p8 = scmp.lt.s32.totalorder %s344_s9, 3 }
   0xc   : > { %p212_p9 = scmp.eq.s32.totalorder %s378_s10, 0  ;;  %s79_s20 = sshll.u32 %s441_s0, 4  ;;  %s80_s20 = int_to_ptr.hbm [resolvable:$true] %s79_s20 }
   0xd   : > { %p68_p10 = pnand %p189_p7, %p67_p8  ;;  %s346_s21 = smov [#allocation2]  }
   0xe   : > { %s81_s22 = sshll.u32 %s346_s21, 4  ;;  %s82_s22 = int_to_ptr.vmem [resolvable:$true] %s81_s22 }
   0xf   : > { %p204_p11 = pneg %p68_p10  ;;  %94 = sbr.rel (%p68_p10) target bundleno = 37 (0x25), region = 24 }
  0x11   : > { %p205_p12 = pnand %p212_p9, %p204_p11 }
  0x13   : > { %207 = dma.hbm_to_vmem [thread:$0]  (!%p205_p12), %s80_s20, 128, %s82_s22, [#allocation3]  }
  0x14   : > { %323 = dma.done.wait (%p212_p9), [#allocation3], 128  }
  0x15   : > { %325 = vsyncadd (%p212_p9), [#allocation3], 4294967168  ;;  %s107_s23 = sand.u32 1, %s336_s7   ;;  %s195_s24 = sshll.u32 %s378_s10, 3  ;;  %v110_v0 = vld [vmem:[#allocation2] sm:$0xff] }
  0x16   : > { %s193_s25 = sshll.u32 %s107_s23, 3  ;;  %s124_s28 = scalar_lea.hbm %s442_s1, %s195_s24  ;;  %v111_v1 = vmul.f32 2.0, %v110_v0 }
  0x17   : > { %s109_s29 = scalar_lea.vmem [#allocation5], %s193_s25  ;;  %s128_s2 = sshll.u32 %s124_s28, 4  ;;  %s129_s2 = int_to_ptr.hbm [resolvable:$true] %s128_s2 }
  0x18   : > { %s126_s30 = sshll.u32 %s109_s29, 4  ;;  %112 = vst [vmem:[%s109_s29] sm:$0xff] %v111_v1  ;;  %s114_s3 = scalar_lea.sflag [#allocation4], %s107_s23  ;;  %s127_s30 = int_to_ptr.vmem [resolvable:$true] %s126_s30 }
  0x19   : > { %s292_s4 = sshra.s32 %s129_s2, 4  ;;  %s298_s13 = scalar_lea.hbm %s442_s1, 16  ;;  %s293_s4 = int_to_ptr.hbm [resolvable:$true] %s292_s4 }
  0x1a   : > { %s294_s5 = scalar_lea.hbm %s293_s4, 8  ;;  %p299_p2 = scmp.lt.s32.totalorder %s293_s4, %s442_s1 }
  0x1b   : > { %p295_p13 = scmp.ne.s32.totalorder %s293_s4, %s294_s5  ;;  %p300_p3 = scmp.lt.s32.totalorder %s298_s13, %s294_s5 }
  0x1d   : > { %p296_p0 = pnand %p295_p13, %p395_p5  ;;  %p301_p4 = por %p300_p3, %p299_p2 }
  0x1f   : > { %p297_p1 = pneg %p296_p0 }
  0x21   : > { %p302_p7 = pnand %p301_p4, %p297_p1 }
  0x23   : > { %305 = shalt.err (!%p302_p7)
}
  0x24   : > { %202 = dma.vmem_to_hbm [thread:$0]  (%p395_p5), %s127_s30, 128, %s129_s2, %s114_s3  }
  0x25 PF: > { %p214_p8 = scmp.ge.s32.totalorder %s344_s9, 2  ;;  %s140_s19 = sand.u32 1, %s332_s6  }
  0x26   : > { %s141_s20 = scalar_lea.sflag [#allocation4], %s140_s19 }
  0x27   : > { %p209_p9 = pnand %p214_p8, %p399_p6 }
  0x29   : > { %p210_p10 = pneg %p209_p9 }
  0x2b   : > { %327 = dma.done.wait (%p210_p10), %s141_s20, 128  }
  0x2c   : > { %329 = vsyncadd (%p210_p10), %s141_s20, 4294967168  ;;  %p12_p11 = scmp.ge.s32.totalorder %s382_s12, 4   ;;  %s445_s6 = smov %s336_s7 }
  0x2d   : > { %s446_s7 = smov %s340_s8  ;;  %s447_s8 = smov %s393_s15 }
  0x2e   : > { %s448_s9 = smov %s382_s12  ;;  %14 = sbr.rel (!%p12_p11) target bundleno = 4 (0x4), region = 61 }
  0x33   :  { %147 = vsyncpa [#allocation3], 1 }
  0x34   :  { %149 = vsyncpa [#allocation3 + $0x1], 1 }
  0x35   :  { %150 = vsyncpa [#allocation4], 1 }
  0x36   :  { %152 = vsyncpa [#allocation4 + $0x1], 1 }

// kernel: tpu_custom_call.1
= control target key start
LH: loop header
LB: loop body
LE: loop exit
PB: predicated region body
PF: predicated region fallthrough
CT: control target
= control target key end

     0   :  { %12 = vsyncpa [#allocation4], 0  ;;  %s317_s0 = inlined_call_operand.<no memory space> [shape: s32[1], index: 0, kind: input, shape index: {}]   ;;  %s318_s1 = inlined_call_operand.hbm [shape: f32[16,128], index: 1, kind: input, shape index: {}]   ;;  %s319_s2 = inlined_call_operand.hbm [shape: f32[128,128], index: 2, kind: input, shape index: {}]   ;;  %s320_s3 = inlined_call_operand.vmem [shape: f32[1,128], index: 3, kind: input, shape index: {}]   ;;  %s321_s4 = inlined_call_operand.hbm [shape: f32[8,128], index: 4, kind: output, shape index: {0}]   ;;  %s322_s5 = inlined_call_operand.hbm [shape: f32[8,128], index: 5, kind: output, shape index: {1}]  }
   0x1   :  { %13 = vsyncpa [#allocation7], 0 }
   0x2   :  { %14 = vsyncpa [#allocation5], 0 }
   0x3   :  { %15 = vsyncpa [#allocation10], 0  ;;  %s22_s19 = sshll.u32 %s318_s1, 4  ;;  %s266_s20 = smov [#allocation3]   ;;  %s23_s19 = int_to_ptr.hbm [resolvable:$true] %s22_s19 }
   0x4   :  { %s24_s21 = sshll.u32 %s266_s20, 4  ;;  %s35_s24 = sshll.u32 %s319_s2, 4  ;;  %s25_s21 = int_to_ptr.vmem [resolvable:$true] %s24_s21  ;;  %s36_s24 = int_to_ptr.hbm [resolvable:$true] %s35_s24 }
   0x5   :  { %s267_s25 = smov 128   ;;  %s268_s26 = smov 8  }
   0x6   :  { %30 = dma.hbm_to_vmem [thread:$0]  %s23_s19, 256, %s25_s21, [#allocation4], %s267_s25, %s267_s25, %s268_s26  }
   0x7   :  { %s269_s27 = smov [#allocation6]  }
   0x8   :  { %s37_s28 = sshll.u32 %s269_s27, 4  ;;  %s38_s28 = int_to_ptr.vmem [resolvable:$true] %s37_s28 }
   0x9   :  { %43 = dma.hbm_to_vmem [thread:$0]  %s36_s24, 2048, %s38_s28, [#allocation7], %s267_s25, %s267_s25, %s268_s26  }
   0xa   :  { %258 = dma.done.wait [#allocation4], 256  }
   0xb   :  { %259 = vsyncadd [#allocation4], 4294967040 }
   0xc   :  { %260 = dma.done.wait [#allocation7], 2048  }
   0xd   :  { %261 = vsyncadd [#allocation7], 4294965248  ;;  %v71_v0 = vld [vmem:[#allocation6 + $0x78] sm:$0xff]  ;;  %v70_v1 = vld [vmem:[#allocation6 + $0x70] sm:$0xff]  ;;  %s270_s29 = smov [#allocation8]   ;;  %s112_s8 = sshll.u32 %s321_s4, 4  ;;  %s113_s8 = int_to_ptr.hbm [resolvable:$true] %s112_s8 }
   0xe   :  { %76 = vmatpush.msra.mxu0 %v71_v0  ;;  %139 = vmatpush.msra.mxu1 %v71_v0  ;;  %v69_v2 = vld [vmem:[#allocation6 + $0x68] sm:$0xff]  ;;  %v68_v3 = vld [vmem:[#allocation6 + $0x60] sm:$0xff]  ;;  %v67_v4 = vld [vmem:[#allocation6 + $0x58] sm:$0xff]  ;;  %s110_s30 = sshll.u32 %s270_s29, 4  ;;  %s271_s9 = smov [#allocation9]   ;;  %s111_s30 = int_to_ptr.vmem [resolvable:$true] %s110_s30 }
   0xf   :  { %v66_v5 = vld [vmem:[#allocation6 + $0x50] sm:$0xff]  ;;  %v65_v6 = vld [vmem:[#allocation6 + $0x48] sm:$0xff]  ;;  %v64_v7 = vld [vmem:[#allocation6 + $0x40] sm:$0xff]  ;;  %s121_s10 = sshll.u32 %s271_s9, 4  ;;  %s123_s13 = sshll.u32 %s322_s5, 4  ;;  %s122_s10 = int_to_ptr.vmem [resolvable:$true] %s121_s10  ;;  %s124_s13 = int_to_ptr.hbm [resolvable:$true] %s123_s13 }
  0x10   :  { %77 = vmatpush.msra.mxu0 %v70_v1  ;;  %140 = vmatpush.msra.mxu1 %v70_v1  ;;  %v63_v8 = vld [vmem:[#allocation6 + $0x38] sm:$0xff]  ;;  %v62_v9 = vld [vmem:[#allocation6 + $0x30] sm:$0xff]  ;;  %v61_v10 = vld [vmem:[#allocation6 + $0x28] sm:$0xff] }
  0x11   :  { %v60_v11 = vld [vmem:[#allocation6 + $0x20] sm:$0xff]  ;;  %v59_v12 = vld [vmem:[#allocation6 + $0x18] sm:$0xff]  ;;  %v58_v13 = vld [vmem:[#allocation6 + $0x10] sm:$0xff] }
  0x12   :  { %78 = vmatpush.msra.mxu0 %v69_v2  ;;  %141 = vmatpush.msra.mxu1 %v69_v2  ;;  %v57_v14 = vld [vmem:[#allocation6 + $0x8] sm:$0xff]  ;;  %v56_v15 = vld [vmem:[#allocation6] sm:$0xff]  ;;  %v54_v16 = vld [vmem:[#allocation3] sm:$0xff] }
  0x13   :  { %v55_v17 = vld [vmem:[#allocation3 + $0x8] sm:$0xff]  ;;  %v161_v18 = vld [vmem:[%s320_s3] ss:$0 sm:$0xff] }
  0x14   :  { %79 = vmatpush.msra.mxu0 %v68_v3  ;;  %142 = vmatpush.msra.mxu1 %v68_v3 }
  0x16   :  { %80 = vmatpush.msra.mxu0 %v67_v4  ;;  %143 = vmatpush.msra.mxu1 %v67_v4 }
  0x18   :  { %81 = vmatpush.msra.mxu0 %v66_v5  ;;  %144 = vmatpush.msra.mxu1 %v66_v5 }
  0x1a   :  { %82 = vmatpush.msra.mxu0 %v65_v6  ;;  %145 = vmatpush.msra.mxu1 %v65_v6 }
  0x1c   :  { %83 = vmatpush.msra.mxu0 %v64_v7  ;;  %146 = vmatpush.msra.mxu1 %v64_v7 }
  0x1e   :  { %84 = vmatpush.msra.mxu0 %v63_v8  ;;  %147 = vmatpush.msra.mxu1 %v63_v8 }
  0x20   :  { %85 = vmatpush.msra.mxu0 %v62_v9  ;;  %148 = vmatpush.msra.mxu1 %v62_v9 }
  0x22   :  { %86 = vmatpush.msra.mxu0 %v61_v10  ;;  %149 = vmatpush.msra.mxu1 %v61_v10 }
  0x24   :  { %87 = vmatpush.msra.mxu0 %v60_v11  ;;  %150 = vmatpush.msra.mxu1 %v60_v11 }
  0x26   :  { %88 = vmatpush.msra.mxu0 %v59_v12  ;;  %151 = vmatpush.msra.mxu1 %v59_v12 }
  0x28   :  { %89 = vmatpush.msra.mxu0 %v58_v13  ;;  %152 = vmatpush.msra.mxu1 %v58_v13 }
  0x2a   :  { %90 = vmatpush.msra.mxu0 %v57_v14  ;;  %153 = vmatpush.msra.mxu1 %v57_v14 }
  0x2c   :  { %91 = vmatpush.msra.mxu0 %v56_v15  ;;  %154 = vmatpush.msra.mxu1 %v56_v15 }
  0x2d   :  { %92 = vmatmul.f32.vlgmr.msra.gmra.mxu0 %v54_v16  ;;  %95 = vmatmul.f32.vlgmr.msra.gmra.mxu1 %v55_v17 }
  0xaa   :  { %v93_v19 = vpop.f32.mrf.mxu0  ;;  %v96_v20 = vpop.f32.mrf.mxu1 }
  0xab   :  { %v94_v21 = vadd.f32 %v161_v18, %v93_v19  ;;  %v97_v22 = vadd.f32 %v161_v18, %v96_v20 }
  0xad   :  { %v99_v23 = vmul.f32 %v94_v21, %v94_v21  ;;  %v100_v24 = vadd.f32 %v97_v22, %v94_v21  ;;  %v101_v25 = vmul.f32 %v97_v22, %v97_v22 }
  0xaf   :  { %v102_v26 = vadd.f32 %v101_v25, %v99_v23  ;;  %103 = vst [vmem:[#allocation8] sm:$0xff] %v100_v24 }
  0xb0   :  { %115 = dma.vmem_to_hbm [thread:$0]  %s111_s30, 128, %s113_s8, [#allocation5]  }
  0xb1   :  { %104 = vst [vmem:[#allocation9] sm:$0xff] %v102_v26 }
  0xb2   :  { %126 = dma.vmem_to_hbm [thread:$0]  %s122_s10, 128, %s124_s13, [#allocation10]  }
  0xb3   :  { %262 = dma.done.wait [#allocation5], 128  }
  0xb4   :  { %263 = vsyncadd [#allocation5], 4294967168 }
  0xb5   :  { %264 = dma.done.wait [#allocation10], 128  }
  0xb6   :  { %265 = vsyncadd [#allocation10], 4294967168 }
  0xb7   :  { %135 = vsyncpa [#allocation4], 1 }
  0xb8   :  { %136 = vsyncpa [#allocation7], 1 }
  0xb9   :  { %137 = vsyncpa [#allocation5], 1 }
  0xba   :  { %138 = vsyncpa [#allocation10], 1 }

</bundles_post_ra>
